<compile_context>
chip_gen: v5e
topology: v5e:2x2
jax: 0.10.0
libtpu: 0.0.40
codegen_flags: <defaults>
</compile_context>

<pallas_src>
import functools
import numpy as np
import jax
import jax.numpy as jnp
from jax.experimental import pallas as pl
from jax.experimental.pallas import tpu as pltpu


def _round_up(x, m):
    return (x + m - 1) // m * m


# ----------------------------- Pallas kernels ------------------------------ #

def _make_ab_kernel(Mp, ml):
    """Fused gather (via index_map) + outer product + multiplicity + CG."""
    def kernel(idx0_ref, idx1_ref, mult_ref, aprev_ref, le_ref, gcg_ref,
               a_out_ref, b_out_ref):
        k = pl.program_id(0)
        a = aprev_ref[0]                      # (Mp, blk)   A_prev[idx0[k]]
        le = le_ref[0]                        # (ml, blk)   LE[idx1[k]]
        # A_nu[k] : outer product over the two m axes, written row-block-wise.
        for p in range(Mp):
            a_out_ref[0, pl.ds(p * ml, ml), :] = a[p:p + 1, :] * le
        # B[k] = mult[k] * gcg @ A_nu[k]  (reuse the just-written VMEM block).
        a_val = a_out_ref[0]                  # (M, blk)
        b = jnp.dot(gcg_ref[...], a_val, preferred_element_type=jnp.float32)
        b_out_ref[0] = b * mult_ref[k]
    return kernel


def _make_a_kernel(Mp, ml):
    def kernel(idx0_ref, idx1_ref, aprev_ref, le_ref, a_out_ref):
        a = aprev_ref[0]                      # (Mp, blk)
        le = le_ref[0]                        # (ml, blk)
        for p in range(Mp):
            a_out_ref[0, pl.ds(p * ml, ml), :] = a[p:p + 1, :] * le
    return kernel


# ------------------------------ Pallas wrappers ---------------------------- #

def _lane_block(n_i_pad, rows_resident):
    """Lane block: multiple of 128, capped so the per-step working set stays
    well inside the vreg file / VMEM block budget (also v7x-safe)."""
    cap = max(128, ((96 * 1024) // (4 * max(rows_resident, 1))) // 128 * 128)
    return int(min(n_i_pad, cap, 1024))


def _vmem_limit(rows_resident, blk):
    need = rows_resident * blk * 4 * 4 + (2 << 20)   # ~double-buffered blocks
    return int(min(max(need, 16 << 20), 40 << 20))   # <=40 MiB: fits v7x 64 MiB


@functools.partial(jax.jit, static_argnums=(6,))
def pallas_compute_AB(A_prev, le, idx0, idx1, mult, gcg, n_i):
    """A_prev: (K_prev, Mp, n_i_pad); le: (n_radial, ml, n_i_pad); gcg: (R, Mp*ml).
       Returns A_nu (K, Mp*ml, n_i_pad)  and  B (R, K, n_i)."""
    _, Mp, n_i_pad = A_prev.shape
    ml = le.shape[1]
    K = idx0.shape[0]
    M = Mp * ml
    R = gcg.shape[0]

    rows = Mp + ml + M + R
    blk = _lane_block(n_i_pad, rows)
    nb = pl.cdiv(n_i_pad, blk)
    kernel = _make_ab_kernel(Mp, ml)

    cost = pl.CostEstimate(
        flops=2 * R * M * K * n_i_pad + M * K * n_i_pad,
        transcendentals=0,
        bytes_accessed=4 * K * n_i_pad * (Mp + ml + M + R))

    A_nu, B_kr = pl.pallas_call(
        kernel,
        out_shape=(jax.ShapeDtypeStruct((K, M, n_i_pad), jnp.float32),
                   jax.ShapeDtypeStruct((K, R, n_i_pad), jnp.float32)),
        grid_spec=pltpu.PrefetchScalarGridSpec(
            num_scalar_prefetch=2,                       # idx0, idx1 -> SMEM
            grid=(K, nb),
            in_specs=[
                pl.BlockSpec(memory_space=pltpu.MemorySpace.SMEM),   # mult[K]
                pl.BlockSpec((1, Mp, blk), lambda k, j, i0, i1: (i0[k], 0, j)),
                pl.BlockSpec((1, ml, blk), lambda k, j, i0, i1: (i1[k], 0, j)),
                pl.BlockSpec((R, M), lambda k, j, i0, i1: (0, 0)),
            ],
            out_specs=(
                pl.BlockSpec((1, M, blk), lambda k, j, i0, i1: (k, 0, j)),
                pl.BlockSpec((1, R, blk), lambda k, j, i0, i1: (k, 0, j)),
            )),
        compiler_params=pltpu.CompilerParams(
            dimension_semantics=("parallel", "parallel"),
            vmem_limit_bytes=_vmem_limit(rows, blk)),
        cost_estimate=cost,
    )(idx0, idx1, mult, A_prev, le, gcg)

    # (K, R, n_i_pad) -> (R, K, n_i): tiny transpose + unpad (B is the small output).
    B = jnp.transpose(B_kr, (1, 0, 2))[:, :, :n_i]
    return A_nu, B


@jax.jit
def pallas_compute_A(A_prev, le, idx0, idx1):
    _, Mp, n_i_pad = A_prev.shape
    ml = le.shape[1]
    K = idx0.shape[0]
    M = Mp * ml

    rows = Mp + ml + M
    blk = _lane_block(n_i_pad, rows)
    nb = pl.cdiv(n_i_pad, blk)
    kernel = _make_a_kernel(Mp, ml)

    cost = pl.CostEstimate(flops=M * K * n_i_pad, transcendentals=0,
                           bytes_accessed=4 * K * n_i_pad * (Mp + ml + M))

    A_nu = pl.pallas_call(
        kernel,
        out_shape=jax.ShapeDtypeStruct((K, M, n_i_pad), jnp.float32),
        grid_spec=pltpu.PrefetchScalarGridSpec(
            num_scalar_prefetch=2,
            grid=(K, nb),
            in_specs=[
                pl.BlockSpec((1, Mp, blk), lambda k, j, i0, i1: (i0[k], 0, j)),
                pl.BlockSpec((1, ml, blk), lambda k, j, i0, i1: (i1[k], 0, j)),
            ],
            out_specs=pl.BlockSpec((1, M, blk), lambda k, j, i0, i1: (k, 0, j))),
        compiler_params=pltpu.CompilerParams(
            dimension_semantics=("parallel", "parallel"),
            vmem_limit_bytes=_vmem_limit(rows, blk)),
        cost_estimate=cost,
    )(idx0, idx1, A_prev, le)

    return A_nu


# -------------- pure-JAX reference hot path (PyTorch layout) ---------------- #

def ref_compute_AB(A_prev, le, idx0, idx1, mult, gcg):
    A = (jnp.take(A_prev, idx0, axis=0)[:, :, None, :] *
         jnp.take(le, idx1, axis=0)[:, None, :, :])
    A = A.reshape(A.shape[0], -1, A.shape[3])
    n_i = A.shape[2]
    X = jnp.swapaxes(A * mult[:, None, None], 0, 1).reshape(A.shape[1], -1)
    B = (gcg @ X).reshape(gcg.shape[0], -1, n_i)
    return A, B


def ref_compute_A(A_prev, le, idx0, idx1):
    A = (jnp.take(A_prev, idx0, axis=0)[:, :, None, :] *
         jnp.take(le, idx1, axis=0)[:, None, :, :])
    return A.reshape(A.shape[0], -1, A.shape[3])


# --------------------- ACECalculator.forward odometer loop ------------------ #
# Faithful translation of the PyTorch control flow (runs in Python, static).

def ace_forward(LE, l_max, combine_indices, multiplicities, generalized_cgs,
                compute_A, compute_AB):
    nu_max = len(combine_indices) - 1
    final_state = [-1] + [l_max] * nu_max
    B_basis = {key: [dict() for _ in range(nu_max + 1)] for key in generalized_cgs}
    L_nu, sigma = 0, 1
    current_location = [-1, -1] + [l_max] * (nu_max - 1)
    current_A_basis = [None] * (nu_max + 1)
    while current_location != final_state:
        if current_location[nu_max] == l_max:
            where_first_l_max = nu_max
            while current_location[where_first_l_max] == l_max:
                where_first_l_max -= 1
            where_first_l_max += 1
            current_location[where_first_l_max - 1] += 1
            for nu in range(where_first_l_max, nu_max + 1):
                current_location[nu] = 0
            nus = range(where_first_l_max - 1, nu_max + 1)
        else:
            current_location[nu_max] += 1
            nus = [nu_max]
        for nu in nus:
            if nu == 1:
                current_A_basis[nu] = LE[(current_location[1],)]
            else:
                l_tuple = tuple(current_location[1:nu + 1])
                if l_tuple in combine_indices[nu]:
                    idx0, idx1 = combine_indices[nu][l_tuple]
                    A_prev = current_A_basis[nu - 1]
                    le = LE[(l_tuple[-1],)]
                    if l_tuple in generalized_cgs[(L_nu, sigma)][nu]:
                        A_nu, B = compute_AB(
                            A_prev, le, idx0, idx1,
                            multiplicities[nu][l_tuple],
                            generalized_cgs[(L_nu, sigma)][nu][l_tuple])
                        B_basis[(L_nu, sigma)][nu][l_tuple] = B
                    else:
                        A_nu = compute_A(A_prev, le, idx0, idx1)
                    current_A_basis[nu] = A_nu
    return B_basis


# ----------------------- deterministic synthetic setup ---------------------- #

def build_config(l_max, nu_max, n_i, n_radial, seed=0):
    rng = np.random.default_rng(seed)
    key = jax.random.PRNGKey(0)

    LE_1 = {}
    for l in range(l_max + 1):
        key, sub = jax.random.split(key)
        LE_1[(l,)] = jax.random.normal(sub, (n_radial[l], 2 * l + 1, n_i),
                                       dtype=jnp.float32)

    ls = list(range(l_max + 1))
    combine_indices = [None, None]
    multiplicities = [None, None]
    gcgs_nu = [dict(), dict()]

    # nu = 2
    d_ci, d_mu, d_cg, K_of = {}, {}, {}, {}
    for l1 in ls:
        for l2 in ls:
            t = (l1, l2)
            K_full = n_radial[l1] * n_radial[l2]
            K = max(1, int(0.75 * K_full))
            perm = rng.permutation(K_full)[:K]
            d_ci[t] = (jnp.asarray(perm // n_radial[l2], dtype=jnp.int32),
                       jnp.asarray(perm % n_radial[l2], dtype=jnp.int32))
            d_mu[t] = jnp.asarray(1.0 + rng.integers(0, 3, size=K), dtype=jnp.float32)
            K_of[t] = K
            if t != (1, 0):                       # one tuple without a CG block
                M = (2 * l1 + 1) * (2 * l2 + 1)
                d_cg[t] = jnp.asarray(rng.standard_normal((2, M)), dtype=jnp.float32)
    combine_indices.append(d_ci); multiplicities.append(d_mu); gcgs_nu.append(d_cg)

    prev_K_of = K_of
    for nu in range(3, nu_max + 1):
        d_ci, d_mu, d_cg, K_of = {}, {}, {}, {}
        for prefix, K_prev in prev_K_of.items():
            for l_last in ls:
                t = prefix + (l_last,)
                if t == (0, 1, 0):                # exercise "not in combine_indices"
                    continue
                K_full = K_prev * n_radial[l_last]
                K = max(1, int(0.6 * K_full))
                perm = rng.permutation(K_full)[:K]
                d_ci[t] = (jnp.asarray(perm // n_radial[l_last], dtype=jnp.int32),
                           jnp.asarray(perm % n_radial[l_last], dtype=jnp.int32))
                d_mu[t] = jnp.asarray(1.0 + rng.integers(0, 3, size=K),
                                      dtype=jnp.float32)
                K_of[t] = K
                if t != (1, 0, 1):                # one tuple without a CG block
                    M = int(np.prod([2 * l + 1 for l in t]))
                    R = 1 + (sum(t) % 2)
                    d_cg[t] = jnp.asarray(rng.standard_normal((R, M)),
                                          dtype=jnp.float32)
        combine_indices.append(d_ci); multiplicities.append(d_mu); gcgs_nu.append(d_cg)
        prev_K_of = K_of

    generalized_cgs = {(0, 1): gcgs_nu}
    return LE_1, combine_indices, multiplicities, generalized_cgs


if __name__ == "__main__":
    l_max, nu_max, n_i = 1, 3, 6
    n_radial = {0: 4, 1: 3}
    LE_1, ci, mult, gcgs = build_config(l_max, nu_max, n_i, n_radial)

    # One-time lane padding to a multiple of 128 so every Pallas block store is
    # a full-width unmasked store; zero pads stay zero through the whole tree.
    n_i_pad = _round_up(n_i, 128)
    LE_pad = {k: jnp.pad(v, ((0, 0), (0, 0), (0, n_i_pad - n_i)))
              for k, v in LE_1.items()}

    compute_AB_pallas = lambda A_prev, le, i0, i1, mu, g: pallas_compute_AB(
        A_prev, le, i0, i1, mu, g, n_i)

    B_pallas = ace_forward(LE_pad, l_max, ci, mult, gcgs,
                           pallas_compute_A, compute_AB_pallas)
    B_ref = ace_forward(LE_1, l_max, ci, mult, gcgs,
                        ref_compute_A, ref_compute_AB)

    ok = True
    for key_ls in gcgs:
        for nu in range(len(ci)):
            keys_p = set(B_pallas[key_ls][nu].keys())
            keys_r = set(B_ref[key_ls][nu].keys())
            if keys_p != keys_r:
                ok = False
                continue
            for t in sorted(keys_p):
                bp = jax.block_until_ready(B_pallas[key_ls][nu][t])
                br = jax.block_until_ready(B_ref[key_ls][nu][t])
                if bp.shape != br.shape or not np.allclose(
                        np.asarray(bp), np.asarray(br), rtol=2e-3, atol=2e-3):
                    ok = False

    if not ok:
        raise SystemExit("mismatch between Pallas and reference ACE forward")
    print("KERNEL_OK")
</pallas_src>

<mosaic_0001>
module attributes {stable_mosaic.version = 11 : i64} {
  func.func @kernel(%arg0: i32, %arg1: i32, %arg2: memref<12xi32, #tpu.memory_space<smem>>, %arg3: memref<12xi32, #tpu.memory_space<smem>>, %arg4: memref<12xf32, #tpu.memory_space<smem>>, %arg5: memref<1x1x128xf32, #tpu.memory_space<vmem>>, %arg6: memref<1x1x128xf32, #tpu.memory_space<vmem>>, %arg7: memref<2x1xf32, #tpu.memory_space<vmem>>, %arg8: memref<1x1x128xf32, #tpu.memory_space<vmem>>, %arg9: memref<1x2x128xf32, #tpu.memory_space<vmem>>) attributes {dimension_semantics = [#tpu.dimension_semantics<parallel>, #tpu.dimension_semantics<parallel>], iteration_bounds = array<i64: 12, 1>, scalar_prefetch = 2 : i64, scratch_operands = 0 : i64, tpu.core_type = #tpu.core_type<tc>, window_params = [{transform_indices = @transform_0, window_bounds = array<i64: 12>}, {transform_indices = @transform_1, window_bounds = array<i64: 1, 1, 128>}, {transform_indices = @transform_2, window_bounds = array<i64: 1, 1, 128>}, {pipeline_mode = #tpu.pipeline_mode<synchronous>, transform_indices = @transform_3, window_bounds = array<i64: 2, 1>}, {transform_indices = @transform_4, window_bounds = array<i64: 1, 1, 128>}, {transform_indices = @transform_5, window_bounds = array<i64: 1, 2, 128>}]} {
    %c0 = arith.constant 0 : index
    %c0_0 = arith.constant 0 : index
    %c0_1 = arith.constant 0 : index
    %0 = vector.load %arg5[%c0, %c0_0, %c0_1] : memref<1x1x128xf32, #tpu.memory_space<vmem>>, vector<1x1x128xf32>
    %1 = vector.shape_cast %0 : vector<1x1x128xf32> to vector<1x128xf32>
    %c0_2 = arith.constant 0 : index
    %c0_3 = arith.constant 0 : index
    %c0_4 = arith.constant 0 : index
    %2 = vector.load %arg6[%c0_2, %c0_3, %c0_4] : memref<1x1x128xf32, #tpu.memory_space<vmem>>, vector<1x1x128xf32>
    %3 = vector.shape_cast %2 : vector<1x1x128xf32> to vector<1x128xf32>
    %4 = arith.mulf %1, %3 : vector<1x128xf32>
    %c0_5 = arith.constant 0 : index
    %c0_6 = arith.constant 0 : index
    %c0_7 = arith.constant 0 : index
    %5 = vector.load %arg8[%c0_5, %c0_6, %c0_7] : memref<1x1x128xf32, #tpu.memory_space<vmem>>, vector<1x1x128xf32>
    %6 = vector.shape_cast %5 : vector<1x1x128xf32> to vector<1x128xf32>
    %7 = vector.shape_cast %4 : vector<1x128xf32> to vector<1x1x128xf32>
    tpu.vector_store %arg8[%c0_5, %c0_6, %c0_7], %7 {strides = array<i32>} : memref<1x1x128xf32, #tpu.memory_space<vmem>>, vector<1x1x128xf32>,
    %c0_8 = arith.constant 0 : index
    %c0_9 = arith.constant 0 : index
    %c0_10 = arith.constant 0 : index
    %8 = vector.load %arg8[%c0_8, %c0_9, %c0_10] : memref<1x1x128xf32, #tpu.memory_space<vmem>>, vector<1x1x128xf32>
    %9 = vector.shape_cast %8 : vector<1x1x128xf32> to vector<1x128xf32>
    %c0_11 = arith.constant 0 : index
    %c0_12 = arith.constant 0 : index
    %10 = vector.load %arg7[%c0_11, %c0_12] : memref<2x1xf32, #tpu.memory_space<vmem>>, vector<2x1xf32>
    %cst = arith.constant dense<0.000000e+00> : vector<2x128xf32>
    %11 = tpu.matmul %10, %9, %cst {dimension_numbers = #tpu.dot_dimension_numbers<[1], [0], [0], [1], [0, 0, 1, 1], [], []>} : vector<2x1xf32>, vector<1x128xf32>, vector<2x128xf32> -> vector<2x128xf32>
    %12 = arith.index_cast %arg0 : i32 to index
    %13 = memref.load %arg4[%12] : memref<12xf32, #tpu.memory_space<smem>>
    %14 = vector.broadcast %13 : f32 to vector<2x128xf32>
    %15 = arith.mulf %11, %14 : vector<2x128xf32>
    %c0_13 = arith.constant 0 : index
    %c0_14 = arith.constant 0 : index
    %c0_15 = arith.constant 0 : index
    %16 = vector.load %arg9[%c0_13, %c0_14, %c0_15] : memref<1x2x128xf32, #tpu.memory_space<vmem>>, vector<1x2x128xf32>
    %17 = vector.shape_cast %16 : vector<1x2x128xf32> to vector<2x128xf32>
    %18 = vector.shape_cast %15 : vector<2x128xf32> to vector<1x2x128xf32>
    tpu.vector_store %arg9[%c0_13, %c0_14, %c0_15], %18 {strides = array<i32>} : memref<1x2x128xf32, #tpu.memory_space<vmem>>, vector<1x2x128xf32>,
    return
  }
  func.func @transform_0(%arg0: i32, %arg1: i32, %arg2: memref<12xi32, #tpu.memory_space<smem>>, %arg3: memref<12xi32, #tpu.memory_space<smem>>) -> i32 {
    %c0_i32 = arith.constant 0 : i32
    %c0_i32_0 = arith.constant 0 : i32
    return %c0_i32 : i32
  }
  func.func @transform_1(%arg0: i32, %arg1: i32, %arg2: memref<12xi32, #tpu.memory_space<smem>>, %arg3: memref<12xi32, #tpu.memory_space<smem>>) -> (i32, i32, i32) {
    %0 = arith.index_cast %arg0 : i32 to index
    %1 = memref.load %arg2[%0] : memref<12xi32, #tpu.memory_space<smem>>
    %c0_i32 = arith.constant 0 : i32
    %c0_i32_0 = arith.constant 0 : i32
    return %1, %c0_i32, %arg1 : i32, i32, i32
  }
  func.func @transform_2(%arg0: i32, %arg1: i32, %arg2: memref<12xi32, #tpu.memory_space<smem>>, %arg3: memref<12xi32, #tpu.memory_space<smem>>) -> (i32, i32, i32) {
    %0 = arith.index_cast %arg0 : i32 to index
    %1 = memref.load %arg3[%0] : memref<12xi32, #tpu.memory_space<smem>>
    %c0_i32 = arith.constant 0 : i32
    %c0_i32_0 = arith.constant 0 : i32
    return %1, %c0_i32, %arg1 : i32, i32, i32
  }
  func.func @transform_3(%arg0: i32, %arg1: i32, %arg2: memref<12xi32, #tpu.memory_space<smem>>, %arg3: memref<12xi32, #tpu.memory_space<smem>>) -> (i32, i32) {
    %c0_i32 = arith.constant 0 : i32
    %c0_i32_0 = arith.constant 0 : i32
    %c0_i32_1 = arith.constant 0 : i32
    return %c0_i32, %c0_i32_0 : i32, i32
  }
  func.func @transform_4(%arg0: i32, %arg1: i32, %arg2: memref<12xi32, #tpu.memory_space<smem>>, %arg3: memref<12xi32, #tpu.memory_space<smem>>) -> (i32, i32, i32) {
    %c0_i32 = arith.constant 0 : i32
    %c0_i32_0 = arith.constant 0 : i32
    return %arg0, %c0_i32, %arg1 : i32, i32, i32
  }
  func.func @transform_5(%arg0: i32, %arg1: i32, %arg2: memref<12xi32, #tpu.memory_space<smem>>, %arg3: memref<12xi32, #tpu.memory_space<smem>>) -> (i32, i32, i32) {
    %c0_i32 = arith.constant 0 : i32
    %c0_i32_0 = arith.constant 0 : i32
    return %arg0, %c0_i32, %arg1 : i32, i32, i32
  }
}

</mosaic_0001>

<bundles_post_ra>
// kernel: pallas_compute_AB.1
= control target key start
LH: loop header
LB: loop body
LE: loop exit
PB: predicated region body
PF: predicated region fallthrough
CT: control target
= control target key end

     0   :  { %s934_s30 = smov [#allocation3]   ;;  %s935_s8 = smov [#allocation4]   ;;  %s1262_s0 = inlined_call_operand.vmem [shape: s32[12], index: 0, kind: input, shape index: {}]   ;;  %s1263_s2 = inlined_call_operand.vmem [shape: f32[12], index: 2, kind: input, shape index: {}]   ;;  %s1264_s3 = inlined_call_operand.hbm [shape: f32[4,1,128], index: 3, kind: input, shape index: {}]   ;;  %s1265_s4 = inlined_call_operand.hbm [shape: f32[4,1,128], index: 4, kind: input, shape index: {}]   ;;  %s1266_s5 = inlined_call_operand.vmem [shape: f32[2,1], index: 5, kind: input, shape index: {}]   ;;  %s1267_s6 = inlined_call_operand.hbm [shape: f32[12,1,128], index: 6, kind: output, shape index: {0}]   ;;  %s1268_s7 = inlined_call_operand.vmem [shape: f32[12,2,128], index: 7, kind: output, shape index: {1}]   ;;  %s1269_s1 = inlined_call_operand.vmem [shape: s32[12], index: 1, kind: input, shape index: {}]  }
   0x1   :  { %1280 = sst [smem:[#allocation30_spill]] %s1263_s2  ;;  %s14_s26 = sshll.u32 %s1262_s0, 4  ;;  %s15_s26 = int_to_ptr.vmem [resolvable:$true] %s14_s26 }
   0x2   :  { %1281 = sst [smem:[#allocation31_spill]] %s1267_s6  ;;  %s19_s29 = sshll.u32 %s1269_s1, 4  ;;  %s20_s29 = int_to_ptr.vmem [resolvable:$true] %s19_s29 }
   0x3   :  { %1282 = sst [smem:[#allocation32_spill]] %s1268_s7 }
   0x4   :  { %17 = dma.vmem_to_smem %s15_s26, 16, %s934_s30, [#allocation2] }
   0x5   :  { %22 = dma.vmem_to_smem %s20_s29, 16, %s935_s8, [#allocation2] }
   0x6   :  { %868 = dma.done.wait [#allocation2], 32 }
   0x7   :  { %869 = vsyncadd [#allocation2], 4294967264 }
   0x8   :  { %25 = sfence }
   0x9   :  { %26 = vsyncpa [#allocation8], 0 }
   0xa   :  { %27 = vsyncpa [#allocation6], 0 }
   0xb   :  { %29 = vsyncpa [#allocation6 + $0x1], 0 }
   0xc   :  { %30 = vsyncpa [#allocation11], 0 }
   0xd   :  { %32 = vsyncpa [#allocation11 + $0x1], 0 }
   0xe   :  { %33 = vsyncpa [#allocation7], 0 }
   0xf   :  { %35 = vsyncpa [#allocation7 + $0x1], 0  ;;  %s983_s0 = smov 0   ;;  %s985_s9 = smov 0  }
  0x10   :  { %s987_s1 = smov 0   ;;  %s989_s10 = smov 0  }
  0x11   :  { %s991_s11 = smov 0   ;;  %s993_s12 = smov 0  }
  0x12   :  { %s995_s13 = smov 0   ;;  %s997_s14 = smov 0  }
  0x13   :  { %s999_s15 = smov 0   ;;  %s1001_s16 = smov 0  }
  0x14   :  { %s1003_s17 = smov 0   ;;  %s1005_s18 = smov 0  }
  0x15 LB: > { %1283 = sst [smem:[#allocation22_spill]] %s888_s0  ;;  %s545_s19 = sadd.s32 4294967295, %s932_s18   ;;  %s932_s18 = sphi %s1005_s18, %s41_s18   ;;  %s928_s17 = sphi %s1003_s17, %s1327_s17   ;;  %s924_s16 = sphi %s1001_s16, %s1326_s16   ;;  %s920_s15 = sphi %s999_s15, %s1317_s15   ;;  %s916_s14 = sphi %s997_s14, %s1325_s14   ;;  %s912_s13 = sphi %s995_s13, %s1324_s13   ;;  %s908_s12 = sphi %s993_s12, %s1323_s12   ;;  %s904_s11 = sphi %s991_s11, %s1322_s11   ;;  %s900_s10 = sphi %s989_s10, %s1321_s10   ;;  %s896_s1 = sphi %s987_s1, %s1314_s1   ;;  %s892_s9 = sphi %s985_s9, %s1320_s9   ;;  %s888_s0 = sphi %s983_s0, %s1319_s0  }
  0x16   : > { %1284 = sst [smem:[#allocation23_spill]] %s896_s1  ;;  %p98_p0 = scmp.ne.s32.totalorder %s916_s14, %s912_s13 }
  0x17   : > { %1285 = sst [smem:[#allocation24_spill]] %s920_s15  ;;  %p1041_p1 = scmp.eq.s32.totalorder %s545_s19, 0 }
  0x18   : > { %s546_s21 = sadd.s32 4294967294, %s932_s18   ;;  %p128_p2 = scmp.ne.s32.totalorder %s904_s11, %s900_s10 }
  0x19   : > { %p1049_p3 = por %p1041_p1, %p98_p0  ;;  %p174_p4 = scmp.ne.s32.totalorder %s896_s1, %s892_s9 }
  0x1a   : > { %p1057_p5 = por %p128_p2, %p1041_p1  ;;  %p175_p6 = scmp.eq.s32.totalorder %s545_s19, 11 }
  0x1b   : > { %p180_p7 = scmp.ne.s32.totalorder %s892_s9, %s888_s0  ;;  %p181_p8 = scmp.eq.s32.totalorder %s546_s21, 11 }
  0x1c   : > { %p1063_p9 = por %p175_p6, %p174_p4  ;;  %p547_p10 = scmp.ge.s32.totalorder %s932_s18, 1 }
  0x1d   : > { %p1068_p11 = por %p181_p8, %p180_p7  ;;  %p216_p12 = scmp.lt.s32.totalorder %s932_s18, 13 }
  0x1e   : > { %s1289_s24 = scalar_select %p1063_p9, 1, 0 }
  0x1f   : > { %s1291_s25 = scalar_select %p1068_p11, 1, 0 }
  0x20   : > { %1290 = sst [smem:[#allocation25_spill]] %s1289_s24  ;;  %p1076_p13 = pnand %p547_p10, %p216_p12 }
  0x21   : > { %1292 = sst [smem:[#allocation26_spill]] %s1291_s25  ;;  %s53_s30 = sadd.s32 1, %s928_s17 }
  0x22   : > { %s1293_s2 = sld [smem:[#allocation30_spill]]  ;;  %p571_p0 = pneg %p1076_p13 }
  0x23   : > { %s78_s8 = sld [smem:[#allocation3 + %s928_s17]]  ;;  %p55_p4 = scmp.ge.s32.totalorder %s53_s30, 12 }
  0x24   : > { %p572_p2 = pnand %p571_p0, %p1041_p1  ;;  %s936_s10 = smov [#allocation5]  }
  0x25   : > { %s1329_s30 = smov (%p55_p4, %s53_s30), 0  ;;  %p92_p6 = scmp.ne.s32.totalorder %s920_s15, %s916_s14 }
  0x26   : > { %1295 = sst [smem:[#allocation27_spill]] %s1329_s30  ;;  %p93_p7 = scmp.eq.s32.totalorder %s932_s18, 0 }
  0x27   : > { %s79_s13 = sld [smem:[#allocation3 + %s1329_s30]]  ;;  %s164_s19 = sadd.s32 1, %s896_s1 }
  0x28   : > { %s228_s28 = sshll.u32 %s1293_s2, 4  ;;  %s159_s21 = ssub.s32 %s928_s17, %s1329_s30  ;;  %s229_s28 = int_to_ptr.vmem [resolvable:$true] %s228_s28 }
  0x29   : > { %574 = dma.vmem_to_smem (!%p572_p2), %s229_s28, 16, %s936_s10, [#allocation8]  }
  0x2a   : > { %p162_p8 = scmp.eq.s32.totalorder %s159_s21, 0  ;;  %p94_p10 = por %p93_p7, %p92_p6 }
  0x2b   : > { %s85_s27 = sadd.s32 1, %s920_s15  ;;  %p1278_p12 = scmp.lt.s32.totalorder %s932_s18, 12 }
  0x2c   : > { %s1098_s26 = scalar_select %p162_p8, %s896_s1, %s164_s19  }
  0x2d   : > { %s80_s28 = ssub.s32 %s78_s8, %s79_s13  ;;  %s242_s10 = sand.u32 1, %s920_s15  }
  0x2e   : > { %1296 = sst [smem:[#allocation28_spill]] %s1098_s26  ;;  %p83_p0 = scmp.eq.s32.totalorder %s80_s28, 0 }
  0x2f   : > { %s559_s2 = scalar_select %p94_p10, [#allocation3], [#allocation13] }
  0x30   : > { %s1104_s25 = scalar_select %p83_p0, %s920_s15, %s85_s27  }
  0x31   : > { %s560_s0 = scalar_select %p94_p10, %s928_s17, 0 }
  0x32   : > { %1297 = sst [smem:[#allocation29_spill]] %s1104_s25  ;;  %s1331_s2 = smov (!%p1278_p12, %s559_s2), [#allocation15] }
  0x33   : > { %s1333_s0 = smov (!%p1278_p12, %s560_s0), 0  ;;  %p1113_p2 = pnand %p1278_p12, %p94_p10 }
  0x34   : > { %s246_s21 = sld [smem:[%s1331_s2 + %s1333_s0]]  ;;  %s245_s13 = scalar_lea.vmem [#allocation9], %s242_s10 }
  0x35   : > { %s1118_s8 = sld [smem:[#allocation4 + %s928_s17]]  ;;  %s254_s28 = sshll.u32 %s245_s13, 4  ;;  %s255_s28 = int_to_ptr.vmem [resolvable:$true] %s254_s28 }
  0x36   : > { %s109_s27 = sld [smem:[#allocation4 + %s1329_s30]]  ;;  %p122_p4 = scmp.ne.s32.totalorder %s908_s12, %s904_s11 }
  0x37   : > { %s115_s25 = sadd.s32 1, %s908_s12  ;;  %s243_s0 = scalar_lea.sflag [#allocation6], %s242_s10 }
  0x38   : > { %p1130_p6 = por %p122_p4, %p93_p7  ;;  %p736_p10 = pneg %p1113_p2 }
  0x3a   : > { %s250_s1 = scalar_lea.hbm %s1264_s3, %s246_s21 }
  0x3b   : > { %s252_s6 = sshll.u32 %s250_s1, 4  ;;  %s739_s1 = scalar_lea.hbm %s1264_s3, 4  ;;  %s253_s6 = int_to_ptr.hbm [resolvable:$true] %s252_s6 }
  0x3c   : > { %s110_s2 = ssub.s32 %s1118_s8, %s109_s27  ;;  %s732_s13 = sshra.s32 %s253_s6, 4  ;;  %s733_s13 = int_to_ptr.hbm [resolvable:$true] %s732_s13 }
  0x3d   : > { %s734_s30 = scalar_lea.hbm %s733_s13, 1  ;;  %p740_p7 = scmp.lt.s32.totalorder %s733_s13, %s1264_s3 }
  0x3e   : > { %p735_p8 = scmp.ne.s32.totalorder %s733_s13, %s734_s30  ;;  %p741_p4 = scmp.lt.s32.totalorder %s739_s1, %s734_s30 }
  0x40   : > { %p737_p0 = pnand %p736_p10, %p735_p8  ;;  %p742_p11 = por %p741_p4, %p740_p7 }
  0x42   : > { %p738_p12 = pneg %p737_p0 }
  0x44   : > { %p743_p9 = pnand %p742_p11, %p738_p12 }
  0x46   : > { %746 = shalt.err (!%p743_p9)
}
  0x47   : > { %580 = dma.hbm_to_vmem [thread:$0]  (!%p1113_p2), %s253_s6, 16, %s255_s28, %s243_s0  }
  0x48   : > { %p113_p8 = scmp.eq.s32.totalorder %s110_s2, 0  ;;  %p1300_p10 = scmp.lt.s32.totalorder %s932_s18, 12 }
  0x49   : > { %s562_s30 = scalar_select %p1130_p6, [#allocation4], [#allocation14] }
  0x4a   : > { %p1149_p0 = pnand %p1300_p10, %p1130_p6  ;;  %p1302_p9 = pmov %p1300_p10 }
  0x4b   : > { %s1156_s10 = scalar_select %p113_p8, %s908_s12, %s115_s25  }
  0x4c   : > { %s563_s19 = scalar_select %p1130_p6, %s928_s17, 0 }
  0x4d   : > { %s1335_s30 = smov (!%p1302_p9, %s562_s30), [#allocation16]  ;;  %p1303_p11 = pmov %p1302_p9 }
  0x4e   : > { %s1304_s6 = sand.u32 1, %s908_s12   ;;  %p766_p2 = pneg %p1149_p0 }
  0x4f   : > { %s1337_s19 = smov (!%p1303_p11, %s563_s19), 0  ;;  %s264_s28 = scalar_lea.vmem [#allocation10], %s1304_s6 }
  0x50   : > { %s265_s8 = sld [smem:[%s1335_s30 + %s1337_s19]]  ;;  %s273_s27 = sshll.u32 %s264_s28, 4  ;;  %s274_s27 = int_to_ptr.vmem [resolvable:$true] %s273_s27 }
  0x51   : > { %s1305_s25 = smov %s1304_s6  ;;  %s769_s19 = scalar_lea.hbm %s1265_s4, 4 }
  0x52   : > { %s262_s26 = scalar_lea.sflag [#allocation11], %s1305_s25 }
  0x56   : > { %s269_s13 = scalar_lea.hbm %s1265_s4, %s265_s8 }
  0x57   : > { %s271_s15 = sshll.u32 %s269_s13, 4  ;;  %s272_s15 = int_to_ptr.hbm [resolvable:$true] %s271_s15 }
  0x58   : > { %s762_s24 = sshra.s32 %s272_s15, 4  ;;  %s763_s24 = int_to_ptr.hbm [resolvable:$true] %s762_s24 }
  0x59   : > { %s764_s1 = scalar_lea.hbm %s763_s24, 1  ;;  %p770_p4 = scmp.lt.s32.totalorder %s763_s24, %s1265_s4 }
  0x5a   : > { %p765_p12 = scmp.ne.s32.totalorder %s763_s24, %s764_s1  ;;  %p771_p8 = scmp.lt.s32.totalorder %s769_s19, %s764_s1 }
  0x5c   : > { %p767_p6 = pnand %p766_p2, %p765_p12  ;;  %p772_p10 = por %p771_p8, %p770_p4 }
  0x5e   : > { %p768_p7 = pneg %p767_p6 }
  0x60   : > { %p773_p9 = pnand %p772_p10, %p768_p7 }
  0x62   : > { %776 = shalt.err (!%p773_p9)
}
  0x63   : > { %585 = dma.hbm_to_vmem [thread:$0]  (!%p1149_p0), %s272_s15, 16, %s274_s27, %s262_s26  }
  0x64   : > { %282 = sbr.rel (%p1076_p13) target bundleno = 256 (0x100), region = 36 }
  0x69   : > { %871 = dma.done.wait (%p1041_p1), [#allocation8], 16  }
  0x6a   : > { %873 = vsyncadd (%p1041_p1), [#allocation8], 4294967280  ;;  %s289_s8 = sand.u32 1, %s916_s14  }
  0x6b   : > { %s290_s2 = scalar_lea.sflag [#allocation6], %s289_s8  ;;  %s292_s0 = scalar_lea.vmem [#allocation9], %s289_s8 }
  0x6c   : > { %875 = dma.done.wait (%p1049_p3), %s290_s2, 16  }
  0x6d   : > { %877 = vsyncadd (%p1049_p3), %s290_s2, 4294967280  ;;  %s298_s29 = sand.u32 1, %s904_s11  }
  0x6e   : > { %s299_s7 = scalar_lea.sflag [#allocation11], %s298_s29  ;;  %s301_s27 = scalar_lea.vmem [#allocation10], %s298_s29 }
  0x6f   : > { %879 = dma.done.wait (%p1057_p5), %s299_s7, 16  }
  0x70   : > { %881 = vsyncadd (%p1057_p5), %s299_s7, 4294967280 }
  0x71   : > { %307 = sfence }
  0x72   : > { %s328_s20 = sand.u32 1, %s892_s9   ;;  %v348_v0 = vld [vmem:[%s292_s0] sm:$0x1]  ;;  %vm358_vm0 = vcmask 1040384   ;;  %s1306_s25 = sld [smem:[#allocation25_spill]]  ;;  %vm354_vm1 = vcmask 7168  }
  0x73   : > { %v349_v1 = vld [vmem:[%s301_s27] sm:$0x1]  ;;  %s329_s13 = scalar_lea.vmem [#allocation12], %s328_s20  ;;  %s1307_s23 = sld [smem:[#allocation31_spill]] }
  0x74   : > { %v350_v2 = vmul.f32 %v349_v1, %v348_v0  ;;  %v353_v3 = vld [vmem:[%s1266_s5] sm:$0x3]  ;;  %s405_s21 = sshll.u32 %s329_s13, 4  ;;  %s387_s19 = scalar_lea.sflag [#allocation7], %s328_s20  ;;  %s406_s21 = int_to_ptr.vmem [resolvable:$true] %s405_s21 }
  0x76   : > { %351 = vst [vmem:[%s329_s13] sm:$0x1] %v350_v2 }
  0x78   : > { %p1308_p3 = scmp.ne.s32.totalorder %s1306_s25, 0 }
  0x79   : > { %s403_s1 = scalar_lea.hbm %s1307_s23, %s924_s16  ;;  %s812_s0 = scalar_lea.hbm %s1307_s23, 12 }
  0x7a   : > { %s407_s30 = sshll.u32 %s403_s1, 4  ;;  %s408_s30 = int_to_ptr.hbm [resolvable:$true] %s407_s30 }
  0x7b   : > { %s806_s6 = sshra.s32 %s408_s30, 4  ;;  %s807_s6 = int_to_ptr.hbm [resolvable:$true] %s806_s6 }
  0x7c   : > { %s808_s28 = scalar_lea.hbm %s807_s6, 1  ;;  %p813_p0 = scmp.lt.s32.totalorder %s807_s6, %s1307_s23 }
  0x7d   : > { %v352_v4 = vld [vmem:[%s329_s13] sm:$0x1]  ;;  %p809_p1 = scmp.ne.s32.totalorder %s807_s6, %s808_s28  ;;  %p814_p11 = scmp.lt.s32.totalorder %s812_s0, %s808_s28 }
  0x7e   : > { %553 = vmatpush.msk.msra.mxu0 %vm358_vm0, %v352_v4 }
  0x7f   : > { %554 = vmatmul.msk.f32.vlgmr.msra.gmra.mxu0 %vm354_vm1, %v353_v3  ;;  %p810_p5 = pnand %p809_p1, %p1308_p3  ;;  %p815_p12 = por %p814_p11, %p813_p0 }
  0x81   : > { %p811_p13 = pneg %p810_p5 }
  0x83   : > { %p816_p2 = pnand %p815_p12, %p811_p13 }
  0x85   : > { %819 = shalt.err (!%p816_p2)
}
  0x86   : > { %569 = dma.vmem_to_hbm [thread:$0]  (%p1308_p3), %s406_s21, 16, %s408_s30, %s387_s19  }
  0x87   : > { %p341_p6 = scmp.lt.s32.totalorder %s924_s16, 11  ;;  %s382_s27 = sld [smem:[#allocation5 + %s924_s16]] }
  0x88   : > { %s1309_s15 = sld [smem:[#allocation32_spill]] }
  0x89   : > { %s1339_s16 = smov (!%p341_p6, %s924_s16), 11 }
  0x8a   : > { %s552_s20 = sshll.u32 %s1339_s16, 1 }
  0x8d   : > { %v383_v5 = vstv %s382_s27 }
  0x8e   : > { %s347_s26 = scalar_lea.vmem %s1309_s15, %s552_s20 }
  0xfc   : > { %v379_v6 = vpop.f32.mrf.mxu0 }
  0xfd   : > { %v384_v7 = vmul.f32 %v383_v5, %v379_v6 }
  0xff   : > { %385 = vst [vmem:[%s347_s26] sm:$0x3] %v384_v7 }
 0x100 PF: > { %s1310_s24 = sld [smem:[#allocation22_spill]]  ;;  %p593_p7 = scmp.ge.s32.totalorder %s932_s18, 2 }
 0x101   : > { %s1311_s25 = sld [smem:[#allocation26_spill]] }
 0x106   : > { %s422_s1 = sand.u32 1, %s1310_s24  }
 0x107   : > { %p1312_p4 = scmp.ne.s32.totalorder %s1311_s25, 0  ;;  %s423_s21 = scalar_lea.sflag [#allocation7], %s422_s1 }
 0x109   : > { %p587_p8 = pnand %p593_p7, %p1312_p4 }
 0x10b   : > { %p588_p10 = pneg %p587_p8 }
 0x10d   : > { %883 = dma.done.wait (%p588_p10), %s423_s21, 16  }
 0x10e   : > { %885 = vsyncadd (%p588_p10), %s423_s21, 4294967280  ;;  %s41_s18 = sadd.s32 1, %s932_s18   ;;  %s1313_s16 = sld [smem:[#allocation23_spill]] }
 0x10f   : > { %p38_p9 = scmp.ge.s32.totalorder %s41_s18, 14   ;;  %s1314_s1 = sld [smem:[#allocation28_spill]] }
 0x110   : > { %s1315_s30 = smov %s1156_s10  ;;  %s1316_s19 = sld [smem:[#allocation24_spill]] }
 0x111   : > { %s1317_s15 = sld [smem:[#allocation29_spill]]  ;;  %s1319_s0 = smov %s892_s9 }
 0x112   : > { %s1318_s6 = sld [smem:[#allocation27_spill]]  ;;  %s1321_s10 = smov %s904_s11 }
 0x113   : > { %s1322_s11 = smov %s908_s12  ;;  %s1323_s12 = smov %s1315_s30 }
 0x114   : > { %s1320_s9 = smov %s1313_s16  ;;  %s1324_s13 = smov %s916_s14 }
 0x115   : > { %s1326_s16 = smov %s928_s17  ;;  %40 = sbr.rel (!%p38_p9) target bundleno = 21 (0x15), region = 111 }
 0x116   : > { %s1325_s14 = smov %s1316_s19 }
 0x118   : > { %s1327_s17 = smov %s1318_s6 }
 0x11a   :  { %438 = vsyncpa [#allocation6], 1 }
 0x11b   :  { %440 = vsyncpa [#allocation6 + $0x1], 1 }
 0x11c   :  { %441 = vsyncpa [#allocation11], 1 }
 0x11d   :  { %443 = vsyncpa [#allocation11 + $0x1], 1 }
 0x11e   :  { %444 = vsyncpa [#allocation7], 1 }
 0x11f   :  { %446 = vsyncpa [#allocation7 + $0x1], 1 }
 0x120   :  { %447 = vsyncpa [#allocation8], 1 }
 0x121   :  { %449 = vsyncpa [#allocation8 + $0x1], 1 }

</bundles_post_ra>
